<compile_context>
chip_gen: v6e
topology: v6e:2x2x1
jax: 0.10.0
libtpu: 0.0.40
codegen_flags: <defaults>
</compile_context>

<pallas_src>
import math

import jax
import jax.numpy as jnp
from jax import lax
from jax.experimental import pallas as pl
from jax.experimental.pallas import tpu as pltpu


_INV_SQRT2 = 1.0 / math.sqrt(2.0)


def _semantic_encoder_kernel(x_ref, w1_ref, b1_ref, w2_ref, b2_ref, o_ref, acc_ref):
    h_idx = pl.program_id(1)

    @pl.when(h_idx == 0)
    def _():
        acc_ref[...] = jnp.zeros_like(acc_ref)

    # Linear 1 on this hidden-dim slice (MXU, f32 accumulation).
    h = jnp.dot(x_ref[...], w1_ref[...], preferred_element_type=jnp.float32)
    h = h + b1_ref[...].astype(jnp.float32)

    # Exact erf GELU (PyTorch nn.GELU() default): 0.5*x*(1+erf(x/sqrt(2))).
    # TODO(synk): tanh-approx GELU would move work VALU->EUP but deviates from
    # the PyTorch exact-erf reference numerics, so it is not applied.
    h = 0.5 * h * (1.0 + lax.erf(h * _INV_SQRT2))

    # Linear 2: partial product of this hidden slice, summed over the H grid axis.
    acc_ref[...] += jnp.dot(h, w2_ref[...], preferred_element_type=jnp.float32)

    @pl.when(h_idx == pl.num_programs(1) - 1)
    def _():
        o_ref[...] = (acc_ref[...] + b2_ref[...].astype(jnp.float32)).astype(o_ref.dtype)


def _round_up(n, m):
    return ((n + m - 1) // m) * m


def _cdiv(a, b):
    return -(-a // b)


def _vmem_capacity_bytes():
    try:
        return int(pltpu.get_tpu_info().vmem_capacity_bytes)
    except Exception:
        return 64 << 20  # conservative fallback: v7x per-TensorCore VMEM


def semantic_encoder(x, w1, b1, w2, b2, *, batch_tile=512, h_tile=None):
    """y = GELU(x @ w1 + b1) @ w2 + b2 with exact-erf GELU.

    x: (B, D_in); w1: (D_in, H); b1: (H,); w2: (H, D_out); b2: (D_out,).
    """
    B, D_in = x.shape
    H = w1.shape[1]
    D_out = w2.shape[1]
    dt = x.dtype
    elt = jnp.dtype(dt).itemsize

    vmem_cap = _vmem_capacity_bytes()

    # ---- Batch tiling: balanced tiles, multiple-of-8 rows, ragged last block
    # (out-of-bounds rows are masked on store -> no batch padding copies). ----
    n_bt = max(1, _cdiv(B, batch_tile))
    TB = _round_up(_cdiv(B, n_bt), 8)
    nb = _cdiv(B, TB)

    # ---- Hidden-dim tiling: keep w1/w2 VMEM-resident when they fit, else
    # tile H as a reduction axis (required for large H on v7x's 64 MiB VMEM). ----
    if h_tile is not None:
        TH = min(_round_up(h_tile, 128), _round_up(H, 128))
    else:
        weight_budget = vmem_cap // 3
        per_h_col = 2 * elt * (D_in + D_out)  # double-buffered w1 column + w2 row
        TH = max(128, ((weight_budget // per_h_col) // 128) * 128)

    if TH >= H:
        TH, nh, H_p = H, 1, H
        w1_p, b1_p, w2_p = w1, b1.reshape(1, H), w2
    else:
        nh = _cdiv(H, TH)
        H_p = nh * TH
        # Zero-padding along H is mathematically inert: b1 pad = 0 ->
        # gelu(0) = 0 -> contributes 0 through the zero rows of w2.
        # TODO(synk): in a real model pad the (static) weights once at init,
        # not per call.
        w1_p = jnp.zeros((D_in, H_p), w1.dtype).at[:, :H].set(w1)
        b1_p = jnp.zeros((1, H_p), b1.dtype).at[0, :H].set(b1)
        w2_p = jnp.zeros((H_p, D_out), w2.dtype).at[:H, :].set(w2)
    b2_p = b2.reshape(1, D_out)

    # ---- VMEM budget: double-buffered tiles + f32 scratch, clamped to the
    # device (>= 32 MiB floor for v5e/v6e scoped defaults, <= 75% of physical
    # VMEM so the request is valid on v7x's 64 MiB). ----
    vmem_needed = (
        2 * elt * TB * D_in                    # x tile (double-buffered)
        + 2 * elt * (D_in * TH + TH * D_out)   # w1 / w2 tiles
        + 2 * elt * (TH + D_out)               # biases
        + 2 * elt * TB * D_out                 # out tile
        + 4 * TB * D_out                       # f32 accumulator scratch
        + 4 * TB * TH                          # f32 intermediate h
    )
    vmem_limit = int(min(max(2 * vmem_needed + (4 << 20), 32 << 20),
                         (3 * vmem_cap) // 4))

    out = pl.pallas_call(
        _semantic_encoder_kernel,
        out_shape=jax.ShapeDtypeStruct((B, D_out), dt),
        grid_spec=pltpu.PrefetchScalarGridSpec(
            num_scalar_prefetch=0,
            grid=(nb, nh),
            in_specs=[
                pl.BlockSpec((TB, D_in), lambda i, h: (i, 0)),    # x batch tile (pipelined)
                pl.BlockSpec((D_in, TH), lambda i, h: (0, h)),    # w1 column slice
                pl.BlockSpec((1, TH), lambda i, h: (0, h)),       # b1 slice
                pl.BlockSpec((TH, D_out), lambda i, h: (h, 0)),   # w2 row slice
                pl.BlockSpec((1, D_out), lambda i, h: (0, 0)),    # b2 (resident)
            ],
            out_specs=pl.BlockSpec((TB, D_out), lambda i, h: (i, 0)),
            scratch_shapes=[pltpu.VMEM((TB, D_out), jnp.float32)],
        ),
        compiler_params=pltpu.CompilerParams(
            dimension_semantics=("parallel", "arbitrary"),  # batch tiles independent
            vmem_limit_bytes=vmem_limit,
        ),
    )(x, w1_p, b1_p, w2_p, b2_p)

    return out


def _reference(x, w1, b1, w2, b2):
    h = x @ w1 + b1
    h = 0.5 * h * (1.0 + lax.erf(h * (1.0 / math.sqrt(2.0))))
    return h @ w2 + b2


if __name__ == "__main__":
    key = jax.random.PRNGKey(0)
    keys = jax.random.split(key, 8)

    def make_params(k1, k2, k3, k4, d_in, d_h, d_out):
        bound1 = 1.0 / math.sqrt(d_in)
        w1 = jax.random.uniform(k1, (d_in, d_h), jnp.float32, -bound1, bound1)
        b1 = jax.random.uniform(k2, (d_h,), jnp.float32, -bound1, bound1)
        bound2 = 1.0 / math.sqrt(d_h)
        w2 = jax.random.uniform(k3, (d_h, d_out), jnp.float32, -bound2, bound2)
        b2 = jax.random.uniform(k4, (d_out,), jnp.float32, -bound2, bound2)
        return w1, b1, w2, b2

    # Case 1: small single-tile path, fully resident weights.
    B, D_in, Hd, D_out = 8, 32, 64, 32
    w1, b1, w2, b2 = make_params(keys[0], keys[1], keys[2], keys[3], D_in, Hd, D_out)
    x = jax.random.normal(keys[4], (B, D_in), jnp.float32)
    out = jax.block_until_ready(semantic_encoder(x, w1, b1, w2, b2))
    ref = _reference(x, w1, b1, w2, b2)
    assert out.shape == (B, D_out)
    assert jnp.allclose(out, ref, atol=1e-5, rtol=1e-5), "case 1 mismatch"

    # Case 2: ragged batch (B not a multiple of 8) -> masked-store last block,
    # no padding copies anywhere.
    B2 = 300
    x2 = jax.random.normal(keys[5], (B2, D_in), jnp.float32)
    out2 = jax.block_until_ready(semantic_encoder(x2, w1, b1, w2, b2))
    ref2 = _reference(x2, w1, b1, w2, b2)
    assert out2.shape == (B2, D_out)
    assert jnp.allclose(out2, ref2, atol=1e-5, rtol=1e-5), "case 2 mismatch"

    # Case 3: forced hidden-dim tiling (the accumulator path a large-hidden
    # config would take on v7x), with non-multiple-of-128 feature dims.
    B3, D_in3, Hd3, D_out3 = 132, 48, 320, 56
    w1c, b1c, w2c, b2c = make_params(keys[6], keys[7], keys[0], keys[1],
                                     D_in3, Hd3, D_out3)
    x3 = jax.random.normal(keys[2], (B3, D_in3), jnp.float32)
    out3 = jax.block_until_ready(
        semantic_encoder(x3, w1c, b1c, w2c, b2c, h_tile=128))
    ref3 = _reference(x3, w1c, b1c, w2c, b2c)
    assert out3.shape == (B3, D_out3)
    assert jnp.allclose(out3, ref3, atol=1e-4, rtol=1e-4), "case 3 mismatch"

    print("KERNEL_OK")
</pallas_src>

<mosaic_0001>
module attributes {stable_mosaic.version = 11 : i64} {
  func.func @_semantic_encoder_kernel(%arg0: i32, %arg1: i32, %arg2: memref<8x32xf32, #tpu.memory_space<vmem>>, %arg3: memref<32x64xf32, #tpu.memory_space<vmem>>, %arg4: memref<1x64xf32, #tpu.memory_space<vmem>>, %arg5: memref<64x32xf32, #tpu.memory_space<vmem>>, %arg6: memref<1x32xf32, #tpu.memory_space<vmem>>, %arg7: memref<8x32xf32, #tpu.memory_space<vmem>>, %arg8: memref<8x32xf32, #tpu.memory_space<vmem>>) attributes {dimension_semantics = [#tpu.dimension_semantics<parallel>, #tpu.dimension_semantics<arbitrary>], iteration_bounds = array<i64: 1, 1>, scalar_prefetch = 0 : i64, scratch_operands = 1 : i64, tpu.core_type = #tpu.core_type<tc>, window_params = [{transform_indices = @transform_0, window_bounds = array<i64: 8, 32>}, {transform_indices = @transform_1, window_bounds = array<i64: 32, 64>}, {transform_indices = @transform_2, window_bounds = array<i64: 1, 64>}, {transform_indices = @transform_3, window_bounds = array<i64: 64, 32>}, {pipeline_mode = #tpu.pipeline_mode<synchronous>, transform_indices = @transform_4, window_bounds = array<i64: 1, 32>}, {transform_indices = @transform_5, window_bounds = array<i64: 8, 32>}]} {
    %c0_i32 = arith.constant 0 : i32
    %0 = arith.cmpi eq, %arg1, %c0_i32 : i32
    %1 = arith.extui %0 : i1 to i32
    %c0_i32_0 = arith.constant 0 : i32
    %2 = arith.cmpi ne, %1, %c0_i32_0 : i32
    scf.if %2 {
      %cst_18 = arith.constant 0.000000e+00 : f32
      %25 = vector.broadcast %cst_18 : f32 to vector<8x32xf32>
      %c0_19 = arith.constant 0 : index
      %c0_20 = arith.constant 0 : index
      %26 = vector.load %arg8[%c0_19, %c0_20] : memref<8x32xf32, #tpu.memory_space<vmem>>, vector<8x32xf32>
      tpu.vector_store %arg8[%c0_19, %c0_20], %25 {strides = array<i32>} : memref<8x32xf32, #tpu.memory_space<vmem>>, vector<8x32xf32>,
    } else {
    }
    %c0 = arith.constant 0 : index
    %c0_1 = arith.constant 0 : index
    %3 = vector.load %arg2[%c0, %c0_1] : memref<8x32xf32, #tpu.memory_space<vmem>>, vector<8x32xf32>
    %c0_2 = arith.constant 0 : index
    %c0_3 = arith.constant 0 : index
    %4 = vector.load %arg3[%c0_2, %c0_3] : memref<32x64xf32, #tpu.memory_space<vmem>>, vector<32x64xf32>
    %cst = arith.constant dense<0.000000e+00> : vector<8x64xf32>
    %5 = tpu.matmul %3, %4, %cst {dimension_numbers = #tpu.dot_dimension_numbers<[1], [0], [0], [1], [0, 0, 1, 1], [], []>} : vector<8x32xf32>, vector<32x64xf32>, vector<8x64xf32> -> vector<8x64xf32>
    %c0_4 = arith.constant 0 : index
    %c0_5 = arith.constant 0 : index
    %6 = vector.load %arg4[%c0_4, %c0_5] : memref<1x64xf32, #tpu.memory_space<vmem>>, vector<1x64xf32>
    %7 = vector.broadcast %6 : vector<1x64xf32> to vector<8x64xf32>
    %8 = arith.addf %5, %7 : vector<8x64xf32>
    %cst_6 = arith.constant 5.000000e-01 : f32
    %9 = vector.broadcast %cst_6 : f32 to vector<8x64xf32>
    %10 = arith.mulf %9, %8 : vector<8x64xf32>
    %cst_7 = arith.constant 0.707106769 : f32
    %11 = vector.broadcast %cst_7 : f32 to vector<8x64xf32>
    %12 = arith.mulf %8, %11 : vector<8x64xf32>
    %13 = math.erf %12 : vector<8x64xf32>
    %cst_8 = arith.constant 1.000000e+00 : f32
    %14 = vector.broadcast %cst_8 : f32 to vector<8x64xf32>
    %15 = arith.addf %14, %13 : vector<8x64xf32>
    %16 = arith.mulf %10, %15 : vector<8x64xf32>
    %c0_9 = arith.constant 0 : index
    %c0_10 = arith.constant 0 : index
    %17 = vector.load %arg8[%c0_9, %c0_10] : memref<8x32xf32, #tpu.memory_space<vmem>>, vector<8x32xf32>
    %c0_11 = arith.constant 0 : index
    %c0_12 = arith.constant 0 : index
    %18 = vector.load %arg5[%c0_11, %c0_12] : memref<64x32xf32, #tpu.memory_space<vmem>>, vector<64x32xf32>
    %cst_13 = arith.constant dense<0.000000e+00> : vector<8x32xf32>
    %19 = tpu.matmul %16, %18, %cst_13 {dimension_numbers = #tpu.dot_dimension_numbers<[1], [0], [0], [1], [0, 0, 1, 1], [], []>} : vector<8x64xf32>, vector<64x32xf32>, vector<8x32xf32> -> vector<8x32xf32>
    %20 = arith.addf %17, %19 : vector<8x32xf32>
    %c0_14 = arith.constant 0 : index
    %c0_15 = arith.constant 0 : index
    %21 = vector.load %arg8[%c0_14, %c0_15] : memref<8x32xf32, #tpu.memory_space<vmem>>, vector<8x32xf32>
    tpu.vector_store %arg8[%c0_14, %c0_15], %20 {strides = array<i32>} : memref<8x32xf32, #tpu.memory_space<vmem>>, vector<8x32xf32>,
    %c0_i32_16 = arith.constant 0 : i32
    %22 = arith.cmpi eq, %arg1, %c0_i32_16 : i32
    %23 = arith.extui %22 : i1 to i32
    %c0_i32_17 = arith.constant 0 : i32
    %24 = arith.cmpi ne, %23, %c0_i32_17 : i32
    scf.if %24 {
      %c0_18 = arith.constant 0 : index
      %c0_19 = arith.constant 0 : index
      %25 = vector.load %arg8[%c0_18, %c0_19] : memref<8x32xf32, #tpu.memory_space<vmem>>, vector<8x32xf32>
      %c0_20 = arith.constant 0 : index
      %c0_21 = arith.constant 0 : index
      %26 = vector.load %arg6[%c0_20, %c0_21] : memref<1x32xf32, #tpu.memory_space<vmem>>, vector<1x32xf32>
      %27 = vector.broadcast %26 : vector<1x32xf32> to vector<8x32xf32>
      %28 = arith.addf %25, %27 : vector<8x32xf32>
      %c0_22 = arith.constant 0 : index
      %c0_23 = arith.constant 0 : index
      %29 = vector.load %arg7[%c0_22, %c0_23] : memref<8x32xf32, #tpu.memory_space<vmem>>, vector<8x32xf32>
      tpu.vector_store %arg7[%c0_22, %c0_23], %28 {strides = array<i32>} : memref<8x32xf32, #tpu.memory_space<vmem>>, vector<8x32xf32>,
    } else {
    }
    return
  }
  func.func @transform_0(%arg0: i32, %arg1: i32) -> (i32, i32) {
    %c0_i32 = arith.constant 0 : i32
    %c0_i32_0 = arith.constant 0 : i32
    return %arg0, %c0_i32 : i32, i32
  }
  func.func @transform_1(%arg0: i32, %arg1: i32) -> (i32, i32) {
    %c0_i32 = arith.constant 0 : i32
    %c0_i32_0 = arith.constant 0 : i32
    return %c0_i32, %arg1 : i32, i32
  }
  func.func @transform_2(%arg0: i32, %arg1: i32) -> (i32, i32) {
    %c0_i32 = arith.constant 0 : i32
    %c0_i32_0 = arith.constant 0 : i32
    return %c0_i32, %arg1 : i32, i32
  }
  func.func @transform_3(%arg0: i32, %arg1: i32) -> (i32, i32) {
    %c0_i32 = arith.constant 0 : i32
    %c0_i32_0 = arith.constant 0 : i32
    return %arg1, %c0_i32 : i32, i32
  }
  func.func @transform_4(%arg0: i32, %arg1: i32) -> (i32, i32) {
    %c0_i32 = arith.constant 0 : i32
    %c0_i32_0 = arith.constant 0 : i32
    %c0_i32_1 = arith.constant 0 : i32
    return %c0_i32, %c0_i32_0 : i32, i32
  }
  func.func @transform_5(%arg0: i32, %arg1: i32) -> (i32, i32) {
    %c0_i32 = arith.constant 0 : i32
    %c0_i32_0 = arith.constant 0 : i32
    return %arg0, %c0_i32 : i32, i32
  }
}

</mosaic_0001>

<bundles_post_ra>
// kernel: tpu_custom_call.1
= control target key start
LH: loop header
LB: loop body
LE: loop exit
PB: predicated region body
PF: predicated region fallthrough
CT: control target
= control target key end

     0   :  { %vm25_vm0 = vcmask 261120   ;;  %v305_v1 = vmov 0.0   ;;  %vm306_vm1 = vmmov 0   ;;  %s390_s0 = inlined_call_operand.vmem [shape: f32[8,32], index: 0, kind: input, shape index: {}]   ;;  %s391_s1 = inlined_call_operand.vmem [shape: f32[32,64], index: 1, kind: input, shape index: {}]   ;;  %s392_s2 = inlined_call_operand.vmem [shape: f32[1,64], index: 2, kind: input, shape index: {}]   ;;  %s393_s3 = inlined_call_operand.vmem [shape: f32[64,32], index: 3, kind: input, shape index: {}]   ;;  %s394_s4 = inlined_call_operand.vmem [shape: f32[1,32], index: 4, kind: input, shape index: {}]   ;;  %s395_s5 = inlined_call_operand.hbm [shape: f32[8,32], index: 5, kind: output, shape index: {}]  }
   0x1   :  { %v31_v0 = vld [vmem:[%s391_s1 + $0x18] sm:$0xff]  ;;  %248 = vmatprep.subr.mxu0 %v305_v1  ;;  %v30_v2 = vld [vmem:[%s391_s1 + $0x10] sm:$0xff]  ;;  %256 = vmatprep.mubr.msk.f32.mxu0 %vm306_vm1, %v305_v1  ;;  %26 = vst.msk [vmem:[#allocation2] sm:$0xff] %vm25_vm0, %v305_v1 }
   0x2   :  { %249 = vmatpush3.msra.mxu0 %v31_v0  ;;  %259 = vmatprep.subr.mxu1 %v305_v1 }
   0x3   :  { %10 = vsyncpa [#allocation4], 0  ;;  %250 = vmatprep.subr.mxu0 %v305_v1  ;;  %v29_v3 = vld [vmem:[%s391_s1 + $0x8] sm:$0xff]  ;;  %275 = vmatprep.mubr.msk.f32.mxu1 %vm306_vm1, %v305_v1  ;;  %v28_v4 = vld [vmem:[%s391_s1] sm:$0xff]  ;;  %vm127_vm2 = vcmask 523264  }
   0x4   :  { %251 = vmatpush3.msra.mxu0 %v30_v2  ;;  %v27_v5 = vld [vmem:[%s390_s0] sm:$0xff]  ;;  %v126_v6 = vld [vmem:[%s393_s3 + $0x38] sm:$0xff]  ;;  %v125_v7 = vld [vmem:[%s393_s3 + $0x30] sm:$0xff] }
   0x5   :  { %252 = vmatprep.subr.mxu0 %v305_v1  ;;  %260 = vmatpush3.msra.mxu1 %v126_v6  ;;  %v124_v8 = vld [vmem:[%s393_s3 + $0x28] sm:$0xff]  ;;  %v123_v9 = vld [vmem:[%s393_s3 + $0x20] sm:$0xff]  ;;  %v122_v10 = vld [vmem:[%s393_s3 + $0x18] sm:$0xff] }
   0x6   :  { %253 = vmatpush3.msra.mxu0 %v29_v3  ;;  %261 = vmatprep.subr.mxu1 %v305_v1  ;;  %v121_v11 = vld [vmem:[%s393_s3 + $0x10] sm:$0xff]  ;;  %v120_v12 = vld [vmem:[%s393_s3 + $0x8] sm:$0xff]  ;;  %v119_v13 = vld [vmem:[%s393_s3] sm:$0xff] }
   0x7   :  { %254 = vmatprep.subr.mxu0 %v305_v1  ;;  %262 = vmatpush3.msra.mxu1 %v125_v7  ;;  %v230_v14 = vld [vmem:[%s392_s2] ss:$0 sm:$0xff]  ;;  %s307_s2 = smov [#allocation3]  }
   0x8   :  { %255 = vmatpush3.msra.mxu0 %v28_v4  ;;  %263 = vmatprep.subr.mxu1 %v305_v1  ;;  %v118_v23 = vld [vmem:[#allocation2] sm:$0xff]  ;;  %s222_s20 = sshll.u32 %s307_s2, 4  ;;  %s223_s20 = int_to_ptr.vmem [resolvable:$true] %s222_s20 }
   0x9   :  { %257 = vmatmul.mubr.msk.f32.vlgmr.msra.gmra.mxu0 %vm25_vm0, %v27_v5  ;;  %264 = vmatpush3.msra.mxu1 %v124_v8  ;;  %v233_v27 = vld [vmem:[%s394_s4] ss:$0 sm:$0xff]  ;;  %s283_s21 = scalar_lea.vmem %s223_s20, 128  ;;  %p288_p1 = scmp.lt.s32.totalorder %s223_s20, %s223_s20 }
   0xa   :  { %265 = vmatprep.subr.mxu1 %v305_v1  ;;  %p284_p0 = scmp.ne.s32.totalorder %s223_s20, %s283_s21  ;;  %p289_p2 = scmp.lt.s32.totalorder %s283_s21, %s283_s21 }
   0xb   :  { %266 = vmatpush3.msra.mxu1 %v123_v9 }
   0xc   :  { %267 = vmatprep.subr.mxu1 %v305_v1  ;;  %p290_p3 = por %p289_p2, %p288_p1 }
   0xd   :  { %268 = vmatpush3.msra.mxu1 %v122_v10 }
   0xe   :  { %269 = vmatprep.subr.mxu1 %v305_v1  ;;  %p291_p4 = pnand %p290_p3, %p284_p0 }
   0xf   :  { %270 = vmatpush3.msra.mxu1 %v121_v11 }
  0x10   :  { %271 = vmatprep.subr.mxu1 %v305_v1 }
  0x11   :  { %272 = vmatpush3.msra.mxu1 %v120_v12 }
  0x12   :  { %273 = vmatprep.subr.mxu1 %v305_v1 }
  0x13   :  { %274 = vmatpush3.msra.mxu1 %v119_v13 }
  0xc9   :  { %v109_v15 = vpop.f32.mrf.mxu0 }
  0xca   :  { %v110_v16 = vadd.f32 %v230_v14, %v109_v15 }
  0xcb   :  { %v258_v17 = vpop.f32.mrf.mxu0 }
  0xcc   :  { %v114_v18 = vmul.f32 0.70710677, %v110_v16  ;;  %v113_v20 = vmul.f32 0.5, %v110_v16 }
  0xce   :  { %281 = verf.f32 %v114_v18 }
  0xdb   :  { %v282_v19 = vpop.eup %281 }
  0xdc   :  { %v116_v21 = vadd.f32 1.0, %v282_v19 }
  0xde   :  { %v117_v22 = vmul.f32 %v116_v21, %v113_v20 }
  0xe0   :  { %276 = vmatmul.mubr.msk.f32.vlgmr.msra.gmra.mxu1 %vm127_vm2, %v117_v22 }
 0x1a0   :  { %v197_v24 = vpop.f32.mrf.mxu1 }
 0x1a1   :  { %v201_v25 = vadd.f32 %v197_v24, %v118_v23 }
 0x1a2   :  { %v277_v26 = vpop.f32.mrf.mxu1 }
 0x1a3   :  { %202 = vst.msk [vmem:[#allocation2] sm:$0xff] %vm25_vm0, %v201_v25 }
 0x1aa   :  { %v206_v28 = vld [vmem:[#allocation2] sm:$0xff] }
 0x1ab   :  { %v214_v29 = vadd.f32 %v233_v27, %v206_v28 }
 0x1ad   :  { %215 = vst.msk [vmem:[#allocation3] sm:$0xff] %vm25_vm0, %v214_v29 }
 0x1ae   :  { %294 = shalt.err (!%p291_p4)
}
 0x1af   :  { %225 = dma.vmem_to_hbm [thread:$0]  %s223_s20, 128, %s395_s5, [#allocation4]  }
 0x1b0   :  { %303 = dma.done.wait [#allocation4], 128  }
 0x1b1   :  { %304 = vsyncadd [#allocation4], 4294967168 }
 0x1b2   :  { %229 = vsyncpa [#allocation4], 1 }

</bundles_post_ra>
